<compile_context>
chip_gen: v5e
topology: v5e:2x2
jax: 0.10.0
libtpu: 0.0.40
codegen_flags: <defaults>
</compile_context>

<pallas_src>
import functools
import math

import jax
import jax.numpy as jnp
from jax.experimental import pallas as pl
from jax.experimental.pallas import tpu as pltpu

_EPS = 1e-5


def _round_up(n, m):
    return ((n + m - 1) // m) * m


# -----------------------------------------------------------------------------
# Kernels
# -----------------------------------------------------------------------------

def _ln_kernel(x_ref, w_ref, o_ref, *, inv_c):
    """Plain path: one logical row per VMEM row; last block dim == true C.

    Ragged row tiles are fine: garbage rows in the boundary block compute
    garbage, but Pallas's masked boundary store never writes them back.
    """
    xf = x_ref[...].astype(jnp.float32)                       # (tr, C)
    # Two-pass (centered) variance == torch.var(unbiased=False).
    mean = jnp.sum(xf, axis=-1, keepdims=True) * inv_c
    xc = xf - mean
    var = jnp.sum(xc * xc, axis=-1, keepdims=True) * inv_c
    inv = jax.lax.rsqrt(var + _EPS)                           # EUP rsqrt
    wf = w_ref[...].astype(jnp.float32)                       # (1, C)
    o_ref[...] = (xf * inv * wf).astype(o_ref.dtype)          # x NOT centered


def _ln_grouped_kernel(x_ref, w_ref, m_ref, mt_ref, o_ref, *, inv_c):
    """Grouped path: g logical rows packed along lanes (lane width g*C is a
    multiple of 128 -> full-lane unmasked stores, no HBM padding).

    m  (g*C, g): block-diagonal ones -> per-row segment sums on the MXU.
    mt (g, g*C): its transpose -> broadcasts per-row scalars back along lanes.
    """
    hi = jax.lax.Precision.HIGHEST                            # keep f32 numerics
    xf = x_ref[...].astype(jnp.float32)                       # (tr_g, g*C)
    m = m_ref[...]                                            # (g*C, g) f32
    mt = mt_ref[...]                                          # (g, g*C) f32
    mean = jnp.dot(xf, m, precision=hi,
                   preferred_element_type=jnp.float32) * inv_c            # (tr_g, g)
    xc = xf - jnp.dot(mean, mt, precision=hi,
                      preferred_element_type=jnp.float32)                  # centered
    var = jnp.dot(xc * xc, m, precision=hi,
                  preferred_element_type=jnp.float32) * inv_c
    inv = jax.lax.rsqrt(var + _EPS)                                        # (tr_g, g)
    inv_b = jnp.dot(inv, mt, precision=hi,
                    preferred_element_type=jnp.float32)                    # (tr_g, g*C)
    wf = w_ref[...].astype(jnp.float32)                                    # (1, g*C)
    o_ref[...] = (xf * inv_b * wf).astype(o_ref.dtype)


# -----------------------------------------------------------------------------
# Wrapper
# -----------------------------------------------------------------------------

def _vmem_plan(itemsize):
    """Generation-aware (block-byte target, scoped-VMEM limit)."""
    cap = None
    try:
        cap = int(pltpu.get_tpu_info().vmem_capacity_bytes)
    except Exception:
        cap = None
    if cap is not None and cap <= 64 * 1024 * 1024:
        # v7x-class: only 64 MiB VMEM per TensorCore -> conservative blocks.
        knee, vmem_limit = 3 * 1024 * 1024, 32 * 1024 * 1024
    else:
        # v5e / v6e: 128 MiB physical VMEM.
        knee, vmem_limit = 4 * 1024 * 1024, 64 * 1024 * 1024
    # Resident per block: double-buffered in+out in the x dtype (4x block) plus
    # ~two full-tile f32 temps for the centered variance; stay under ~75% of
    # the scoped limit so the compiler never shrinks/spills the streaming tile.
    factor = 4 + 2 * ((4 + itemsize - 1) // itemsize)
    budget = (3 * vmem_limit // 4) // factor
    return max(512 * 1024, min(knee, budget)), vmem_limit


def _row_tile(n_rows, vmem_lane_width, itemsize, target_block_bytes):
    """Row tile: multiple of the sublane minimum, sized to the byte target.

    Ragged tails are handled by Pallas masked boundary blocks (no padding).
    If everything would fit in <4 blocks, split further so the v7x megacore
    still gets >=2 pipelined blocks per TensorCore.
    """
    min_rows = 8 * max(1, 4 // itemsize)          # f32: 8, bf16: 16, int8/fp8: 32
    if n_rows <= min_rows:
        return n_rows, 1                          # single full-extent block
    tr = (target_block_bytes // (vmem_lane_width * itemsize)) // min_rows * min_rows
    tr = max(min_rows, tr)
    tr = min(tr, _round_up(n_rows, min_rows))
    if pl.cdiv(n_rows, tr) < 4:
        tr = max(min_rows, _round_up(pl.cdiv(n_rows, 4), min_rows))
    return tr, pl.cdiv(n_rows, tr)


def biasfree_layernorm(x, weight):
    """BiasFree LayerNorm: x / sqrt(var(x, -1, unbiased=False) + 1e-5) * weight.

    x: (..., C); weight: (C,). Returns same shape/dtype as x.
    """
    orig_shape = x.shape
    C = int(orig_shape[-1])
    rows = math.prod(int(d) for d in orig_shape[:-1])
    itemsize = jnp.dtype(x.dtype).itemsize
    target_block_bytes, vmem_limit = _vmem_plan(itemsize)

    # Lane-grouping factor: packing g consecutive rows along lanes makes the
    # lane width g*C a multiple of 128 with a FREE reshape (no HBM copies).
    g = 128 // math.gcd(C, 128)
    use_grouped = g > 1 and rows % g == 0

    if use_grouped:
        rows2, cols2 = rows // g, g * C
        x2 = x.reshape(rows2, cols2)              # free: memory order preserved
        w2 = jnp.tile(weight.reshape(1, C), (1, g))
        # Block-diagonal ones matrices (tiny) for MXU segment sums / broadcast.
        lane_seg = jnp.arange(cols2, dtype=jnp.int32) // C
        m = (lane_seg[:, None] == jnp.arange(g, dtype=jnp.int32)[None, :]
             ).astype(jnp.float32)                # (g*C, g)
        mt = m.T                                  # (g, g*C)
        tr, grid = _row_tile(rows2, cols2, itemsize, target_block_bytes)
        kernel = functools.partial(_ln_grouped_kernel, inv_c=1.0 / float(C))
        operands = (x2, w2, m, mt)
        in_specs = [
            pl.BlockSpec((tr, cols2), lambda i: (i, 0)),
            pl.BlockSpec((1, cols2), lambda i: (0, 0)),
            pl.BlockSpec((cols2, g), lambda i: (0, 0)),
            pl.BlockSpec((g, cols2), lambda i: (0, 0)),
        ]
    else:
        rows2, cols2 = rows, C
        x2 = x.reshape(rows2, cols2)
        vmem_lanes = _round_up(C, 128)            # VMEM footprint only; no HBM pad
        w2 = weight.reshape(1, C)
        tr, grid = _row_tile(rows2, vmem_lanes, itemsize, target_block_bytes)
        kernel = functools.partial(_ln_kernel, inv_c=1.0 / float(C))
        operands = (x2, w2)
        in_specs = [
            pl.BlockSpec((tr, cols2), lambda i: (i, 0)),
            pl.BlockSpec((1, cols2), lambda i: (0, 0)),
        ]
        # TODO(synk): if blocks stay <1 MiB for some shape, deepen prefetch via
        # pipeline_mode=pl.Buffered(3) on the x BlockSpec.

    # True traffic only (no pad/slice copies any more).
    cost = pl.CostEstimate(
        flops=7 * rows * C,
        transcendentals=rows,
        bytes_accessed=2 * rows * C * itemsize
        + C * jnp.dtype(weight.dtype).itemsize,
    )

    out = pl.pallas_call(
        kernel,
        out_shape=jax.ShapeDtypeStruct((rows2, cols2), x.dtype),
        grid_spec=pltpu.PrefetchScalarGridSpec(
            num_scalar_prefetch=0,
            grid=(grid,),
            in_specs=in_specs,
            out_specs=pl.BlockSpec((tr, cols2), lambda i: (i, 0)),
        ),
        compiler_params=pltpu.CompilerParams(
            dimension_semantics=("parallel",),
            vmem_limit_bytes=vmem_limit,
        ),
        cost_estimate=cost,
    )(*operands)

    return out.reshape(orig_shape)


if __name__ == "__main__":
    key = jax.random.PRNGKey(0)
    k1, k2, k3 = jax.random.split(key, 3)

    def ref_ln(x, w):
        mu = jnp.mean(x, axis=-1, keepdims=True)
        var = jnp.mean((x - mu) ** 2, axis=-1, keepdims=True)
        return x / jnp.sqrt(var + _EPS) * w

    # Case 1: Restormer-like 4-D tensor. C=48 (not a multiple of 128) and
    # rows = 2*7*9 = 126 (not divisible by g=8) -> plain path: unpadded blocks,
    # masked narrow stores, ragged cdiv row tiling, megacore split into 4 blocks.
    x1 = jax.random.normal(k1, (2, 7, 9, 48), dtype=jnp.float32)
    w1 = jnp.ones((48,), dtype=jnp.float32)       # module inits weight to ones
    o1 = jax.block_until_ready(biasfree_layernorm(x1, w1))
    assert jnp.allclose(o1, ref_ln(x1, w1), atol=1e-5, rtol=1e-5), "case 1 mismatch"

    # Case 2: (batch=2, seq=8, hidden=32). C=32 -> g=4 and rows=16 divisible by
    # g -> grouped lane-dense path (lane width 128, MXU segment sums).
    x2 = jax.random.normal(k2, (2, 8, 32), dtype=jnp.float32)
    w2 = 1.0 + 0.1 * jax.random.normal(k3, (32,), dtype=jnp.float32)
    o2 = jax.block_until_ready(biasfree_layernorm(x2, w2))
    assert jnp.allclose(o2, ref_ln(x2, w2), atol=1e-4, rtol=1e-4), "case 2 mismatch"

    # Case 3: lane-aligned channels (C multiple of 128) -> plain lane-dense path.
    x3 = jax.random.normal(k1, (2, 16, 128), dtype=jnp.float32)
    w3 = jnp.ones((128,), dtype=jnp.float32)
    o3 = jax.block_until_ready(biasfree_layernorm(x3, w3))
    assert jnp.allclose(o3, ref_ln(x3, w3), atol=1e-5, rtol=1e-5), "case 3 mismatch"

    print("KERNEL_OK")
</pallas_src>

<mosaic_0001>
module attributes {stable_mosaic.version = 11 : i64} {
  func.func @_ln_kernel(%arg0: i32, %arg1: memref<32x48xf32, #tpu.memory_space<vmem>>, %arg2: memref<1x48xf32, #tpu.memory_space<vmem>>, %arg3: memref<32x48xf32, #tpu.memory_space<vmem>>) attributes {dimension_semantics = [#tpu.dimension_semantics<parallel>], iteration_bounds = array<i64: 4>, scalar_prefetch = 0 : i64, scratch_operands = 0 : i64, tpu.core_type = #tpu.core_type<tc>, window_params = [{transform_indices = @transform_0, window_bounds = array<i64: 32, 48>}, {pipeline_mode = #tpu.pipeline_mode<synchronous>, transform_indices = @transform_1, window_bounds = array<i64: 1, 48>}, {transform_indices = @transform_2, window_bounds = array<i64: 32, 48>}]} {
    %c0 = arith.constant 0 : index
    %c0_0 = arith.constant 0 : index
    %0 = vector.load %arg1[%c0, %c0_0] : memref<32x48xf32, #tpu.memory_space<vmem>>, vector<32x48xf32>
    %cst = arith.constant dense<0.000000e+00> : vector<32xf32>
    %1 = vector.multi_reduction <add>, %0, %cst [1] : vector<32x48xf32> to vector<32xf32>
    %2 = vector.shape_cast %1 : vector<32xf32> to vector<32x1xf32>
    %cst_1 = arith.constant 0.020833334 : f32
    %3 = vector.broadcast %cst_1 : f32 to vector<32x1xf32>
    %4 = arith.mulf %2, %3 : vector<32x1xf32>
    %5 = vector.broadcast %4 : vector<32x1xf32> to vector<32x48xf32>
    %6 = arith.subf %0, %5 : vector<32x48xf32>
    %7 = arith.mulf %6, %6 : vector<32x48xf32>
    %cst_2 = arith.constant dense<0.000000e+00> : vector<32xf32>
    %8 = vector.multi_reduction <add>, %7, %cst_2 [1] : vector<32x48xf32> to vector<32xf32>
    %9 = vector.shape_cast %8 : vector<32xf32> to vector<32x1xf32>
    %cst_3 = arith.constant 0.020833334 : f32
    %10 = vector.broadcast %cst_3 : f32 to vector<32x1xf32>
    %11 = arith.mulf %9, %10 : vector<32x1xf32>
    %cst_4 = arith.constant 9.99999974E-6 : f32
    %12 = vector.broadcast %cst_4 : f32 to vector<32x1xf32>
    %13 = arith.addf %11, %12 : vector<32x1xf32>
    %14 = math.rsqrt %13 : vector<32x1xf32>
    %c0_5 = arith.constant 0 : index
    %c0_6 = arith.constant 0 : index
    %15 = vector.load %arg2[%c0_5, %c0_6] : memref<1x48xf32, #tpu.memory_space<vmem>>, vector<1x48xf32>
    %16 = vector.broadcast %14 : vector<32x1xf32> to vector<32x48xf32>
    %17 = arith.mulf %0, %16 : vector<32x48xf32>
    %18 = vector.broadcast %15 : vector<1x48xf32> to vector<32x48xf32>
    %19 = arith.mulf %17, %18 : vector<32x48xf32>
    %c0_7 = arith.constant 0 : index
    %c0_8 = arith.constant 0 : index
    %20 = vector.load %arg3[%c0_7, %c0_8] : memref<32x48xf32, #tpu.memory_space<vmem>>, vector<32x48xf32>
    tpu.vector_store %arg3[%c0_7, %c0_8], %19 {strides = array<i32>} : memref<32x48xf32, #tpu.memory_space<vmem>>, vector<32x48xf32>,
    return
  }
  func.func @transform_0(%arg0: i32) -> (i32, i32) {
    %c0_i32 = arith.constant 0 : i32
    %c0_i32_0 = arith.constant 0 : i32
    return %arg0, %c0_i32 : i32, i32
  }
  func.func @transform_1(%arg0: i32) -> (i32, i32) {
    %c0_i32 = arith.constant 0 : i32
    %c0_i32_0 = arith.constant 0 : i32
    %c0_i32_1 = arith.constant 0 : i32
    return %c0_i32, %c0_i32_0 : i32, i32
  }
  func.func @transform_2(%arg0: i32) -> (i32, i32) {
    %c0_i32 = arith.constant 0 : i32
    %c0_i32_0 = arith.constant 0 : i32
    return %arg0, %c0_i32 : i32, i32
  }
}

</mosaic_0001>

<bundles_post_ra>
// kernel: tpu_custom_call.1
= control target key start
LH: loop header
LB: loop body
LE: loop exit
PB: predicated region body
PF: predicated region fallthrough
CT: control target
= control target key end

     0   :  { %s359_s9 = smov 0   ;;  %s418_s0 = inlined_call_operand.vmem [shape: f32[126,48], index: 0, kind: input, shape index: {}]   ;;  %s419_s1 = inlined_call_operand.vmem [shape: f32[1,48], index: 1, kind: input, shape index: {}]   ;;  %s420_s2 = inlined_call_operand.vmem [shape: f32[126,48], index: 2, kind: output, shape index: {}]  }
   0x1 LB: > { %s308_s10 = sadd.s32 4294967295, %s342_s9   ;;  %p312_p0 = scmp.ge.s32.totalorder %s342_s9, 1  ;;  %s342_s9 = sphi %s359_s9, %s12_s9  }
   0x2   : > { %p113_p1 = scmp.lt.s32.totalorder %s342_s9, 5 }
   0x4   : > { %p114_p2 = pnand %p312_p0, %p113_p1 }
   0x5   : > { %s313_s11 = sshll.u32 (!%p114_p2), %s308_s10, 2 }
   0x6   : > { %117 = sbr.rel (%p114_p2) target bundleno = 291 (0x123), region = 28  ;;  %p136_p3 = scmp.lt.s32.totalorder (!%p114_p2), %s313_s11, 15 }
   0xb   : > { %s422_s11 = smov (!%p136_p3, %s313_s11), 15  ;;  %vm151_vm0 = vcmask 392192   ;;  %v327_v54 = vld [vmem:[%s419_s1] ss:$0 sm:$0xff] }
   0xc   : > { %s314_s12 = sshll.u32 %s422_s11, 3 }
   0xd   : > { %s139_s15 = scalar_lea.vmem %s418_s0, %s314_s12  ;;  %s145_s20 = scalar_lea.vmem %s420_s2, %s314_s12 }
   0xe   : > { %v375_v0 = vld [vmem:[%s139_s15 + $0x10] sm:$0xff]  ;;  %v377_v1 = vld [vmem:[%s139_s15] sm:$0xff]  ;;  %v383_v4 = vld [vmem:[%s139_s15 + $0x18] sm:$0xff] }
   0xf   : > { %v158_v2 = vsel %vm151_vm0, %v375_v0, 0.0  ;;  %v152_v3 = vsel %vm151_vm0, %v377_v1, 0.0  ;;  %v385_v5 = vld [vmem:[%s139_s15 + $0x8] sm:$0xff]  ;;  %v161_v6 = vsel %vm151_vm0, %v383_v4, 0.0 }
  0x10   : > { %159 = vadd.xlane.f32.xlu1 %v158_v2  ;;  %153 = vadd.xlane.f32.xlu0 %v152_v3  ;;  %v155_v7 = vsel %vm151_vm0, %v385_v5, 0.0 }
  0x18   : > { %162 = vadd.xlane.f32.xlu1 %v161_v6  ;;  %156 = vadd.xlane.f32.xlu0 %v155_v7 }
  0x83   : > { %v160_v8 = vpop.xlane.xlu1 %159  ;;  %v154_v9 = vpop.xlane.xlu0 %153 }
  0x84   : > { %v166_v10 = vmul.f32 0.020833334, %v160_v8  ;;  %v164_v11 = vmul.f32 0.020833334, %v154_v9 }
  0x86   : > { %v170_v12 = vsub.f32 %v375_v0, %v166_v10  ;;  %v168_v13 = vsub.f32 %v377_v1, %v164_v11 }
  0x88   : > { %v174_v14 = vmul.f32 %v170_v12, %v170_v12  ;;  %v172_v15 = vmul.f32 %v168_v13, %v168_v13 }
  0x8a   : > { %v182_v16 = vsel %vm151_vm0, %v174_v14, 0.0  ;;  %v176_v17 = vsel %vm151_vm0, %v172_v15, 0.0 }
  0x8b   : > { %v163_v18 = vpop.xlane.xlu1 %162  ;;  %183 = vadd.xlane.f32.xlu0 %v182_v16  ;;  %177 = vadd.xlane.f32.xlu2 %v176_v17  ;;  %v157_v19 = vpop.xlane.xlu0 %156 }
  0x8c   : > { %v167_v20 = vmul.f32 0.020833334, %v163_v18  ;;  %v165_v21 = vmul.f32 0.020833334, %v157_v19 }
  0x8e   : > { %v171_v22 = vsub.f32 %v383_v4, %v167_v20  ;;  %v169_v23 = vsub.f32 %v385_v5, %v165_v21 }
  0x90   : > { %v175_v24 = vmul.f32 %v171_v22, %v171_v22  ;;  %v173_v25 = vmul.f32 %v169_v23, %v169_v23 }
  0x92   : > { %v185_v26 = vsel %vm151_vm0, %v175_v24, 0.0  ;;  %v179_v27 = vsel %vm151_vm0, %v173_v25, 0.0 }
  0x93   : > { %186 = vadd.xlane.f32.xlu1 %v185_v26  ;;  %180 = vadd.xlane.f32.xlu2 %v179_v27 }
  0xfe   : > { %v178_v28 = vpop.xlane.xlu2 %177  ;;  %v184_v29 = vpop.xlane.xlu0 %183 }
  0xff   : > { %v188_v30 = vmul.f32 0.020833334, %v178_v28  ;;  %v190_v31 = vmul.f32 0.020833334, %v184_v29 }
 0x101   : > { %v192_v32 = vadd.f32 1e-05, %v188_v30  ;;  %v194_v33 = vadd.f32 1e-05, %v190_v31 }
 0x103   : > { %328 = vrsqrt.f32 %v192_v32  ;;  %vm202_vm3 = vweird.f32 %v192_v32  ;;  %vm222_vm5 = vweird.f32 %v194_v33 }
 0x104   : > { %330 = vrsqrt.f32 %v194_v33 }
 0x106   : > { %v187_v34 = vpop.xlane.xlu1 %186  ;;  %v181_v35 = vpop.xlane.xlu2 %180 }
 0x107   : > { %v191_v36 = vmul.f32 0.020833334, %v187_v34  ;;  %v189_v37 = vmul.f32 0.020833334, %v181_v35 }
 0x109   : > { %v329_v38 = vpop.eup %328  ;;  %v195_v39 = vadd.f32 1e-05, %v191_v36  ;;  %v193_v40 = vadd.f32 1e-05, %v189_v37 }
 0x10a   : > { %v331_v41 = vpop.eup %330  ;;  %v197_v42 = vmul.f32 %v329_v38, %v192_v32  ;;  %vm203_vm1 = vweird.f32 %v329_v38 }
 0x10b   : > { %v217_v43 = vmul.f32 %v331_v41, %v194_v33  ;;  %332 = vrsqrt.f32 %v195_v39  ;;  %vm223_vm2 = vweird.f32 %v331_v41  ;;  %vm204_vm4 = vmor %vm202_vm3, %vm203_vm1  ;;  %vm232_vm9 = vweird.f32 %v195_v39 }
 0x10c   : > { %v198_v44 = vmul.f32 %v329_v38, %v197_v42  ;;  %334 = vrsqrt.f32 %v193_v40  ;;  %vm224_vm6 = vmor %vm222_vm5, %vm223_vm2  ;;  %vm212_vm11 = vweird.f32 %v193_v40 }
 0x10d   : > { %v218_v45 = vmul.f32 %v331_v41, %v217_v43 }
 0x10e   : > { %v199_v46 = vmul.f32 0.5, %v198_v44 }
 0x10f   : > { %v219_v47 = vmul.f32 0.5, %v218_v45 }
 0x110   : > { %v200_v48 = vsub.f32 1.5, %v199_v46 }
 0x111   : > { %v333_v49 = vpop.eup %332  ;;  %v220_v50 = vsub.f32 1.5, %v219_v47 }
 0x112   : > { %v335_v51 = vpop.eup %334  ;;  %v201_v52 = vmul.f32 %v329_v38, %v200_v48  ;;  %v227_v53 = vmul.f32 %v333_v49, %v195_v39  ;;  %vm233_vm7 = vweird.f32 %v333_v49 }
 0x113   : > { %v221_v55 = vmul.f32 %v331_v41, %v220_v50  ;;  %v207_v56 = vmul.f32 %v335_v51, %v193_v40  ;;  %vm213_vm8 = vweird.f32 %v335_v51  ;;  %vm234_vm10 = vmor %vm232_vm9, %vm233_vm7 }
 0x114   : > { %v205_v57 = vsel %vm204_vm4, %v329_v38, %v201_v52  ;;  %v228_v58 = vmul.f32 %v333_v49, %v227_v53  ;;  %vm214_vm12 = vmor %vm212_vm11, %vm213_vm8 }
 0x115   : > { %v237_v59 = vmul.f32 %v205_v57, %v377_v1  ;;  %v225_v60 = vsel %vm224_vm6, %v331_v41, %v221_v55  ;;  %v208_v61 = vmul.f32 %v335_v51, %v207_v56 }
 0x116   : > { %v239_v62 = vmul.f32 %v225_v60, %v375_v0  ;;  %v229_v63 = vmul.f32 0.5, %v228_v58 }
 0x117   : > { %v244_v2 = vmul.f32 %v327_v54, %v237_v59  ;;  %v209_v3 = vmul.f32 0.5, %v208_v61 }
 0x118   : > { %v246_v6 = vmul.f32 %v327_v54, %v239_v62  ;;  %v230_v7 = vsub.f32 1.5, %v229_v63 }
 0x119   : > { %248 = vst.msk [vmem:[%s145_s20] sm:$0xff] %vm151_vm0, %v244_v2  ;;  %v210_v8 = vsub.f32 1.5, %v209_v3 }
 0x11a   : > { %250 = vst.msk [vmem:[%s145_s20 + $0x10] sm:$0xff] %vm151_vm0, %v246_v6  ;;  %v231_v1 = vmul.f32 %v333_v49, %v230_v7 }
 0x11b   : > { %v211_v9 = vmul.f32 %v335_v51, %v210_v8 }
 0x11c   : > { %v235_v10 = vsel %vm234_vm10, %v333_v49, %v231_v1 }
 0x11d   : > { %v240_v0 = vmul.f32 %v235_v10, %v383_v4  ;;  %v215_v11 = vsel %vm214_vm12, %v335_v51, %v211_v9 }
 0x11e   : > { %v238_v12 = vmul.f32 %v215_v11, %v385_v5 }
 0x11f   : > { %v247_v13 = vmul.f32 %v327_v54, %v240_v0 }
 0x120   : > { %v245_v14 = vmul.f32 %v327_v54, %v238_v12 }
 0x121   : > { %251 = vst.msk [vmem:[%s145_s20 + $0x18] sm:$0xff] %vm151_vm0, %v247_v13 }
 0x122   : > { %249 = vst.msk [vmem:[%s145_s20 + $0x8] sm:$0xff] %vm151_vm0, %v245_v14 }
 0x123 PF: > { %s12_s9 = sadd.s32 1, %s342_s9  }
 0x124   : > { %p9_p4 = scmp.ge.s32.totalorder %s12_s9, 6  }
 0x126   :  { %11 = sbr.rel (!%p9_p4) target bundleno = 1 (0x1), region = 58 }

</bundles_post_ra>
